<compile_context>
chip_gen: v5e
topology: v5e:2x2
jax: 0.10.0
libtpu: 0.0.40
codegen_flags: <defaults>
</compile_context>

<pallas_src>
import functools

import jax
import jax.numpy as jnp
from jax.experimental import pallas as pl
from jax.experimental.pallas import tpu as pltpu

_MASK = -1e30  # effectively -inf for masked (padded) sequence positions


def _attention_kernel(x_ref, w_ref, b_ref, o_ref, m_sc, l_sc, acc_sc, *,
                      seq_len, needs_mask):
    # x_ref : (TB, TS, H) VMEM, input dtype    w_ref : (H, 128) VMEM (resident)
    # b_ref : (1, 1) SMEM f32 scalar           o_ref : (TB, H) VMEM
    # m_sc/l_sc : (TB, 1) f32 running max / denom
    # acc_sc    : (TB, H) f32 running unnormalized context
    s_idx = pl.program_id(1)
    n_s = pl.num_programs(1)

    @pl.when(s_idx == 0)
    def _():
        m_sc[...] = jnp.full_like(m_sc, _MASK)
        l_sc[...] = jnp.zeros_like(l_sc)
        acc_sc[...] = jnp.zeros_like(acc_sc)

    x = x_ref[...]                                   # (TB, TS, H), input dtype
    tb, ts, h = x.shape

    # ---- Linear(H -> 1) scores on the MXU (weight replicated over 128 lanes);
    # keep lane 0 -> a column with S on the sublane axis.
    x2 = x.reshape(tb * ts, h)                       # ts % 8 == 0 -> layout no-op
    s_full = jnp.dot(x2, w_ref[...], preferred_element_type=jnp.float32)
    scores = s_full[:, 0:1].reshape(tb, ts, 1) + b_ref[0, 0]   # (TB, TS, 1) f32

    if needs_mask:                                   # static: only if S was padded
        pos = s_idx * ts + jax.lax.broadcasted_iota(jnp.int32, scores.shape, 1)
        scores = jnp.where(pos < seq_len, scores, _MASK)

    # ---- Online softmax over the sequence axis (sublane reduces on a column).
    m_prev = m_sc[...]                               # (TB, 1)
    m_new = jnp.maximum(m_prev, jnp.max(scores, axis=1))
    alpha = jnp.exp(m_prev - m_new)                  # (TB, 1)
    e = jnp.exp(scores - m_new[:, :, None])          # (TB, TS, 1) f32
    l_sc[...] = alpha * l_sc[...] + jnp.sum(e, axis=1)

    # ---- Unnormalized context: sum_s e[b,s] * x[b,s,:].
    # Lane splat of the attn column; multiply in the input dtype, reduce the
    # S-chunk in f32 and accumulate into the f32 scratch.
    p = e.astype(x.dtype)                            # (TB, TS, 1)
    ctx = jnp.sum((p * x).astype(jnp.float32), axis=1)   # (TB, H) f32
    acc_sc[...] = alpha * acc_sc[...] + ctx
    m_sc[...] = m_new

    @pl.when(s_idx == n_s - 1)
    def _():
        # Deferred, exact normalization (single divide per output element).
        o_ref[...] = (acc_sc[...] / l_sc[...]).astype(o_ref.dtype)


def _round_up(x, m):
    return ((x + m - 1) // m) * m


def _cdiv(a, b):
    return (a + b - 1) // b


def _vmem_limit_bytes(default=32 << 20):
    """Generation-aware scoped-VMEM request (half of physical VMEM, capped)."""
    try:
        cap = pltpu.get_tpu_info().vmem_capacity_bytes
        return int(min(96 << 20, max(default, cap // 2)))
    except Exception:
        return default


def _select_tiles(B, S, H, itemsize, vmem_limit):
    """Pick 8-aligned (tb, ts): a few-MiB per-step footprint (intermediates
    included), >=2 batch tiles when the batch allows (megacore), and >=4 total
    grid steps when a step would otherwise exceed ~1 MiB of input (overlap)."""
    budget = max(1 << 20, min(8 << 20, vmem_limit // 4))
    b8 = _round_up(B, 8)
    s8 = _round_up(S, 8)

    def step_bytes(tb, ts):
        x_slab = 2 * tb * ts * H * itemsize          # double-buffered input block
        scores = tb * ts * 128 * 4                   # f32 MXU score slab
        prod = tb * ts * H * 4                       # f32 e*x product chunk
        resident = 2 * H * 128 * itemsize + tb * (2 * H + 2) * 4
        return x_slab + scores + prod + resident

    tb = min(b8, 64)
    if b8 >= 16 and b8 // tb < 2:                    # keep >=2 batch tiles
        tb = max(8, (b8 // 2) // 8 * 8)

    ts = s8
    while step_bytes(tb, ts) > budget and ts > 8:    # fit the per-step budget
        ts = _round_up(max(8, ts // 2), 8)
    while step_bytes(tb, ts) > budget and tb > 8:
        tb -= 8
    # Prefer multiple grid steps for DMA/compute overlap when slabs are large.
    while (_cdiv(b8, tb) * _cdiv(s8, ts) < 4 and ts > 8
           and tb * ts * H * itemsize > (1 << 20)):
        ts = _round_up(max(8, ts // 2), 8)
    return tb, ts


def attention_forward(lstm_output, weight, bias, *, tile_b=None, tile_s=None):
    """lstm_output: (B, S, H); weight: (H, 1); bias: (1,)  ->  (B, H)."""
    B, S, H = lstm_output.shape
    dtype = lstm_output.dtype
    vmem_limit = _vmem_limit_bytes()
    tb, ts = _select_tiles(B, S, H, dtype.itemsize, vmem_limit)
    if tile_b is not None:
        tb = _round_up(min(tile_b, _round_up(B, 8)), 8)
    if tile_s is not None:
        ts = _round_up(min(tile_s, _round_up(S, 8)), 8)

    b_pad = _round_up(B, tb)
    s_pad = _round_up(S, ts)
    x = lstm_output
    if (b_pad, s_pad) != (B, S):
        x = jnp.pad(x, ((0, b_pad - B), (0, s_pad - S), (0, 0)))

    # Linear(H -> 1) weight replicated across the 128-lane axis so the score
    # contraction is a lane-dense MXU matmul (kernel keeps lane 0).
    w_pad = jnp.broadcast_to(weight.reshape(H, 1), (H, 128)).astype(dtype)
    b_smem = bias.reshape(1, 1).astype(jnp.float32)

    kernel = functools.partial(_attention_kernel, seq_len=S,
                               needs_mask=(s_pad != S))

    out = pl.pallas_call(
        kernel,
        out_shape=jax.ShapeDtypeStruct((b_pad, H), dtype),
        grid_spec=pltpu.PrefetchScalarGridSpec(
            num_scalar_prefetch=0,
            grid=(b_pad // tb, s_pad // ts),
            in_specs=[
                pl.BlockSpec((tb, ts, H), lambda b, s: (b, s, 0)),    # x slab
                pl.BlockSpec((H, 128), lambda b, s: (0, 0)),          # weight (resident)
                pl.BlockSpec(memory_space=pltpu.MemorySpace.SMEM),    # scalar bias
            ],
            out_specs=pl.BlockSpec((tb, H), lambda b, s: (b, 0)),     # per-batch-tile acc
            scratch_shapes=[
                pltpu.VMEM((tb, 1), jnp.float32),    # running max
                pltpu.VMEM((tb, 1), jnp.float32),    # running denom
                pltpu.VMEM((tb, H), jnp.float32),    # running unnormalized context
            ],
        ),
        compiler_params=pltpu.CompilerParams(
            dimension_semantics=("parallel", "arbitrary"),
            vmem_limit_bytes=vmem_limit,
        ),
    )(x, w_pad, b_smem)
    return out[:B]


def attention_reference(lstm_output, weight, bias):
    """Plain-JAX reference mirroring the PyTorch forward."""
    scores = jnp.einsum("bsh,ho->bso", lstm_output, weight) + bias  # (B, S, 1)
    attn = jax.nn.softmax(scores, axis=1)
    return jnp.sum(attn * lstm_output, axis=1)                      # (B, H)


def _run_case(key, B, S, H, **tile_kwargs):
    kx, kw, kb = jax.random.split(key, 3)
    x = jax.random.normal(kx, (B, S, H), dtype=jnp.float32)
    bound = 1.0 / (H ** 0.5)
    w = jax.random.uniform(kw, (H, 1), minval=-bound, maxval=bound,
                           dtype=jnp.float32)
    b = jax.random.uniform(kb, (1,), minval=-bound, maxval=bound,
                           dtype=jnp.float32)
    out = jax.block_until_ready(attention_forward(x, w, b, **tile_kwargs))
    ref = attention_reference(x, w, b)
    assert out.shape == (B, H)
    assert jnp.allclose(out, ref, atol=1e-4, rtol=1e-4), (
        f"mismatch vs reference for shape ({B},{S},{H})")
    return out


if __name__ == "__main__":
    key = jax.random.PRNGKey(0)
    k0, k1, k2 = jax.random.split(key, 3)
    # Primary small case consistent with the module: (batch, seq, hidden).
    _run_case(k0, B=8, S=8, H=32)
    # Awkward (non-multiple-of-8) batch / seq -> exercises padding + masking.
    _run_case(k1, B=5, S=12, H=32)
    # Forced small S tile -> exercises the multi-step online-softmax path.
    _run_case(k2, B=16, S=24, H=32, tile_s=8)
    print("KERNEL_OK")
</pallas_src>

<mosaic_0001>
module attributes {stable_mosaic.version = 11 : i64} {
  func.func @_attention_kernel(%arg0: i32, %arg1: i32, %arg2: memref<8x8x32xf32, #tpu.memory_space<vmem>>, %arg3: memref<32x128xf32, #tpu.memory_space<vmem>>, %arg4: memref<1x1xf32, #tpu.memory_space<smem>>, %arg5: memref<8x32xf32, #tpu.memory_space<vmem>>, %arg6: memref<8x1xf32, #tpu.memory_space<vmem>>, %arg7: memref<8x1xf32, #tpu.memory_space<vmem>>, %arg8: memref<8x32xf32, #tpu.memory_space<vmem>>) attributes {dimension_semantics = [#tpu.dimension_semantics<parallel>, #tpu.dimension_semantics<arbitrary>], iteration_bounds = array<i64: 1, 1>, scalar_prefetch = 0 : i64, scratch_operands = 3 : i64, tpu.core_type = #tpu.core_type<tc>, window_params = [{transform_indices = @transform_0, window_bounds = array<i64: 8, 8, 32>}, {pipeline_mode = #tpu.pipeline_mode<synchronous>, transform_indices = @transform_1, window_bounds = array<i64: 32, 128>}, {transform_indices = @transform_2, window_bounds = array<i64: 1, 1>}, {transform_indices = @transform_3, window_bounds = array<i64: 8, 32>}]} {
    %c0_i32 = arith.constant 0 : i32
    %0 = arith.cmpi eq, %arg1, %c0_i32 : i32
    %1 = arith.extui %0 : i1 to i32
    %c0_i32_0 = arith.constant 0 : i32
    %2 = arith.cmpi ne, %1, %c0_i32_0 : i32
    scf.if %2 {
      %cst_24 = arith.constant -1.000000e+30 : f32
      %38 = vector.broadcast %cst_24 : f32 to vector<8x1xf32>
      %c0_25 = arith.constant 0 : index
      %c0_26 = arith.constant 0 : index
      %39 = vector.load %arg6[%c0_25, %c0_26] : memref<8x1xf32, #tpu.memory_space<vmem>>, vector<8x1xf32>
      tpu.vector_store %arg6[%c0_25, %c0_26], %38 {strides = array<i32>} : memref<8x1xf32, #tpu.memory_space<vmem>>, vector<8x1xf32>,
      %cst_27 = arith.constant 0.000000e+00 : f32
      %40 = vector.broadcast %cst_27 : f32 to vector<8x1xf32>
      %c0_28 = arith.constant 0 : index
      %c0_29 = arith.constant 0 : index
      %41 = vector.load %arg7[%c0_28, %c0_29] : memref<8x1xf32, #tpu.memory_space<vmem>>, vector<8x1xf32>
      tpu.vector_store %arg7[%c0_28, %c0_29], %40 {strides = array<i32>} : memref<8x1xf32, #tpu.memory_space<vmem>>, vector<8x1xf32>,
      %cst_30 = arith.constant 0.000000e+00 : f32
      %42 = vector.broadcast %cst_30 : f32 to vector<8x32xf32>
      %c0_31 = arith.constant 0 : index
      %c0_32 = arith.constant 0 : index
      %43 = vector.load %arg8[%c0_31, %c0_32] : memref<8x32xf32, #tpu.memory_space<vmem>>, vector<8x32xf32>
      tpu.vector_store %arg8[%c0_31, %c0_32], %42 {strides = array<i32>} : memref<8x32xf32, #tpu.memory_space<vmem>>, vector<8x32xf32>,
    } else {
    }
    %c0 = arith.constant 0 : index
    %c0_1 = arith.constant 0 : index
    %c0_2 = arith.constant 0 : index
    %3 = vector.load %arg2[%c0, %c0_1, %c0_2] : memref<8x8x32xf32, #tpu.memory_space<vmem>>, vector<8x8x32xf32>
    %4 = vector.shape_cast %3 : vector<8x8x32xf32> to vector<64x32xf32>
    %c0_3 = arith.constant 0 : index
    %c0_4 = arith.constant 0 : index
    %5 = vector.load %arg3[%c0_3, %c0_4] : memref<32x128xf32, #tpu.memory_space<vmem>>, vector<32x128xf32>
    %cst = arith.constant dense<0.000000e+00> : vector<64x128xf32>
    %6 = tpu.matmul %4, %5, %cst {dimension_numbers = #tpu.dot_dimension_numbers<[1], [0], [0], [1], [0, 0, 1, 1], [], []>} : vector<64x32xf32>, vector<32x128xf32>, vector<64x128xf32> -> vector<64x128xf32>
    %7 = vector.extract_strided_slice %6 {offsets = [0, 0], sizes = [64, 1], strides = [1, 1]} : vector<64x128xf32> to vector<64x1xf32>
    %8 = vector.shape_cast %7 : vector<64x1xf32> to vector<8x8x1xf32>
    %c0_5 = arith.constant 0 : index
    %c0_6 = arith.constant 0 : index
    %9 = memref.load %arg4[%c0_5, %c0_6] : memref<1x1xf32, #tpu.memory_space<smem>>
    %10 = vector.broadcast %9 : f32 to vector<8x8x1xf32>
    %11 = arith.addf %8, %10 : vector<8x8x1xf32>
    %c0_7 = arith.constant 0 : index
    %c0_8 = arith.constant 0 : index
    %12 = vector.load %arg6[%c0_7, %c0_8] : memref<8x1xf32, #tpu.memory_space<vmem>>, vector<8x1xf32>
    %cst_9 = arith.constant dense<0xFF800000> : vector<8x1xf32>
    %13 = vector.multi_reduction <maximumf>, %11, %cst_9 [1] : vector<8x8x1xf32> to vector<8x1xf32>
    %14 = arith.maximumf %12, %13 : vector<8x1xf32>
    %15 = arith.subf %12, %14 : vector<8x1xf32>
    %16 = math.exp %15 : vector<8x1xf32>
    %17 = vector.shape_cast %14 : vector<8x1xf32> to vector<8x1x1xf32>
    %18 = vector.broadcast %17 : vector<8x1x1xf32> to vector<8x8x1xf32>
    %19 = arith.subf %11, %18 : vector<8x8x1xf32>
    %20 = math.exp %19 : vector<8x8x1xf32>
    %c0_10 = arith.constant 0 : index
    %c0_11 = arith.constant 0 : index
    %21 = vector.load %arg7[%c0_10, %c0_11] : memref<8x1xf32, #tpu.memory_space<vmem>>, vector<8x1xf32>
    %22 = arith.mulf %16, %21 : vector<8x1xf32>
    %cst_12 = arith.constant dense<0.000000e+00> : vector<8x1xf32>
    %23 = vector.multi_reduction <add>, %20, %cst_12 [1] : vector<8x8x1xf32> to vector<8x1xf32>
    %24 = arith.addf %22, %23 : vector<8x1xf32>
    %c0_13 = arith.constant 0 : index
    %c0_14 = arith.constant 0 : index
    %25 = vector.load %arg7[%c0_13, %c0_14] : memref<8x1xf32, #tpu.memory_space<vmem>>, vector<8x1xf32>
    tpu.vector_store %arg7[%c0_13, %c0_14], %24 {strides = array<i32>} : memref<8x1xf32, #tpu.memory_space<vmem>>, vector<8x1xf32>,
    %26 = vector.broadcast %20 : vector<8x8x1xf32> to vector<8x8x32xf32>
    %27 = arith.mulf %26, %3 : vector<8x8x32xf32>
    %cst_15 = arith.constant dense<0.000000e+00> : vector<8x32xf32>
    %28 = vector.multi_reduction <add>, %27, %cst_15 [1] : vector<8x8x32xf32> to vector<8x32xf32>
    %c0_16 = arith.constant 0 : index
    %c0_17 = arith.constant 0 : index
    %29 = vector.load %arg8[%c0_16, %c0_17] : memref<8x32xf32, #tpu.memory_space<vmem>>, vector<8x32xf32>
    %30 = vector.broadcast %16 : vector<8x1xf32> to vector<8x32xf32>
    %31 = arith.mulf %30, %29 : vector<8x32xf32>
    %32 = arith.addf %31, %28 : vector<8x32xf32>
    %c0_18 = arith.constant 0 : index
    %c0_19 = arith.constant 0 : index
    %33 = vector.load %arg8[%c0_18, %c0_19] : memref<8x32xf32, #tpu.memory_space<vmem>>, vector<8x32xf32>
    tpu.vector_store %arg8[%c0_18, %c0_19], %32 {strides = array<i32>} : memref<8x32xf32, #tpu.memory_space<vmem>>, vector<8x32xf32>,
    %c0_20 = arith.constant 0 : index
    %c0_21 = arith.constant 0 : index
    %34 = vector.load %arg6[%c0_20, %c0_21] : memref<8x1xf32, #tpu.memory_space<vmem>>, vector<8x1xf32>
    tpu.vector_store %arg6[%c0_20, %c0_21], %14 {strides = array<i32>} : memref<8x1xf32, #tpu.memory_space<vmem>>, vector<8x1xf32>,
    %c0_i32_22 = arith.constant 0 : i32
    %35 = arith.cmpi eq, %arg1, %c0_i32_22 : i32
    %36 = arith.extui %35 : i1 to i32
    %c0_i32_23 = arith.constant 0 : i32
    %37 = arith.cmpi ne, %36, %c0_i32_23 : i32
    scf.if %37 {
      %c0_24 = arith.constant 0 : index
      %c0_25 = arith.constant 0 : index
      %38 = vector.load %arg8[%c0_24, %c0_25] : memref<8x32xf32, #tpu.memory_space<vmem>>, vector<8x32xf32>
      %c0_26 = arith.constant 0 : index
      %c0_27 = arith.constant 0 : index
      %39 = vector.load %arg7[%c0_26, %c0_27] : memref<8x1xf32, #tpu.memory_space<vmem>>, vector<8x1xf32>
      %40 = vector.broadcast %39 : vector<8x1xf32> to vector<8x32xf32>
      %41 = arith.divf %38, %40 : vector<8x32xf32>
      %c0_28 = arith.constant 0 : index
      %c0_29 = arith.constant 0 : index
      %42 = vector.load %arg5[%c0_28, %c0_29] : memref<8x32xf32, #tpu.memory_space<vmem>>, vector<8x32xf32>
      tpu.vector_store %arg5[%c0_28, %c0_29], %41 {strides = array<i32>} : memref<8x32xf32, #tpu.memory_space<vmem>>, vector<8x32xf32>,
    } else {
    }
    return
  }
  func.func @transform_0(%arg0: i32, %arg1: i32) -> (i32, i32, i32) {
    %c0_i32 = arith.constant 0 : i32
    %c0_i32_0 = arith.constant 0 : i32
    return %arg0, %arg1, %c0_i32 : i32, i32, i32
  }
  func.func @transform_1(%arg0: i32, %arg1: i32) -> (i32, i32) {
    %c0_i32 = arith.constant 0 : i32
    %c0_i32_0 = arith.constant 0 : i32
    %c0_i32_1 = arith.constant 0 : i32
    return %c0_i32, %c0_i32_0 : i32, i32
  }
  func.func @transform_2(%arg0: i32, %arg1: i32) -> (i32, i32) {
    %c0_i32 = arith.constant 0 : i32
    %c0_i32_0 = arith.constant 0 : i32
    %c0_i32_1 = arith.constant 0 : i32
    return %c0_i32, %c0_i32_0 : i32, i32
  }
  func.func @transform_3(%arg0: i32, %arg1: i32) -> (i32, i32) {
    %c0_i32 = arith.constant 0 : i32
    %c0_i32_0 = arith.constant 0 : i32
    return %arg0, %c0_i32 : i32, i32
  }
}

</mosaic_0001>

<bundles_post_ra>
// kernel: tpu_custom_call.1
= control target key start
LH: loop header
LB: loop body
LE: loop exit
PB: predicated region body
PF: predicated region fallthrough
CT: control target
= control target key end

     0   :  { %9 = vsyncpa [#allocation7], 0  ;;  %s848_s0 = inlined_call_operand.hbm [shape: f32[8,8,32], index: 0, kind: input, shape index: {}]   ;;  %s849_s1 = inlined_call_operand.hbm [shape: f32[32,128], index: 1, kind: input, shape index: {}]   ;;  %s850_s2 = inlined_call_operand.<no memory space> [shape: f32[1,1], index: 2, kind: input, shape index: {}]   ;;  %s851_s3 = inlined_call_operand.hbm [shape: f32[8,32], index: 3, kind: output, shape index: {}]  }
   0x1   :  { %10 = vsyncpa [#allocation10], 0 }
   0x2   :  { %11 = vsyncpa [#allocation8], 0  ;;  %s16_s14 = sshll.u32 %s848_s0, 4  ;;  %s657_s15 = smov [#allocation6]   ;;  %s17_s14 = int_to_ptr.hbm [resolvable:$true] %s16_s14 }
   0x3   :  { %s18_s16 = sshll.u32 %s657_s15, 4  ;;  %s29_s19 = sshll.u32 %s849_s1, 4  ;;  %s19_s16 = int_to_ptr.vmem [resolvable:$true] %s18_s16  ;;  %s30_s19 = int_to_ptr.hbm [resolvable:$true] %s29_s19 }
   0x4   :  { %s658_s20 = smov 128   ;;  %s659_s21 = smov 8  }
   0x5   :  { %24 = dma.hbm_to_vmem [thread:$0]  %s17_s14, 1024, %s19_s16, [#allocation7], %s658_s20, %s658_s20, %s659_s21  }
   0x6   :  { %s660_s22 = smov [#allocation9]  }
   0x7   :  { %s31_s23 = sshll.u32 %s660_s22, 4  ;;  %s32_s23 = int_to_ptr.vmem [resolvable:$true] %s31_s23 }
   0x8   :  { %37 = dma.hbm_to_vmem [thread:$0]  %s30_s19, 512, %s32_s23, [#allocation10], %s658_s20, %s658_s20, %s659_s21  }
   0x9   :  { %651 = dma.done.wait [#allocation7], 1024  }
   0xa   :  { %652 = vsyncadd [#allocation7], 4294966272 }
   0xb   :  { %653 = dma.done.wait [#allocation10], 512  }
   0xc   :  { %654 = vsyncadd [#allocation10], 4294966784  ;;  %v68_v0 = vld [vmem:[#allocation9 + $0x18] sm:$0xff]  ;;  %v67_v1 = vld [vmem:[#allocation9 + $0x10] sm:$0xff]  ;;  %vm55_vm0 = vcmask 261120   ;;  %vm52_vm1 = vcmask 7168   ;;  %v136_v13 = vstv %s850_s2 }
   0xd   :  { %106 = vmatpush.msra.mxu0 %v68_v0  ;;  %536 = vmatpush.msra.mxu1 %v68_v0  ;;  %v66_v2 = vld [vmem:[#allocation9 + $0x8] sm:$0xff]  ;;  %v65_v3 = vld [vmem:[#allocation9] sm:$0xff]  ;;  %v693_v5 = vld [vmem:[#allocation6 + $0x10] sm:$0xff]  ;;  %v661_v12 = vmov -1e+30   ;;  %v662_v47 = vmov 0.0  }
   0xe   :  { %537 = vmatpush.msra.mxu2 %v68_v0  ;;  %538 = vmatpush.msra.mxu3 %v68_v0  ;;  %v691_v4 = vld [vmem:[#allocation6] sm:$0xff]  ;;  %v697_v7 = vld [vmem:[#allocation6 + $0x30] sm:$0xff]  ;;  %v707_v8 = vld [vmem:[#allocation6 + $0x8] sm:$0xff]  ;;  %53 = vst.msk [vmem:[#allocation2] sm:$0xff] %vm52_vm1, %v661_v12  ;;  %v663_v56 = vmov 0   ;;  %vm211_vm2 = vcmask 1041409  }
   0xf   :  { %107 = vmatpush.msra.mxu0 %v67_v1  ;;  %539 = vmatpush.msra.mxu1 %v67_v1  ;;  %v695_v6 = vld [vmem:[#allocation6 + $0x20] sm:$0xff]  ;;  %v709_v9 = vld [vmem:[#allocation6 + $0x18] sm:$0xff]  ;;  %v711_v10 = vld [vmem:[#allocation6 + $0x28] sm:$0xff]  ;;  %54 = vst.msk [vmem:[#allocation3] sm:$0xff] %vm52_vm1, %v662_v47  ;;  %vm213_vm3 = vcmask 1042434   ;;  %vm215_vm4 = vcmask 1043459  }
  0x10   :  { %540 = vmatpush.msra.mxu2 %v67_v1  ;;  %541 = vmatpush.msra.mxu3 %v67_v1  ;;  %v713_v11 = vld [vmem:[#allocation6 + $0x38] sm:$0xff]  ;;  %56 = vst.msk [vmem:[#allocation4] sm:$0xff] %vm55_vm0, %v662_v47  ;;  %vm217_vm5 = vcmask 1044484   ;;  %vm219_vm6 = vcmask 1045509   ;;  %vm221_vm7 = vcmask 1046534   ;;  %vm223_vm8 = vcmask 1047559  }
  0x11   :  { %108 = vmatpush.msra.mxu0 %v66_v2  ;;  %542 = vmatpush.msra.mxu1 %v66_v2  ;;  %s664_s2 = smov [#allocation11]   ;;  %s517_s27 = sshll.u32 %s851_s3, 4  ;;  %s518_s27 = int_to_ptr.hbm [resolvable:$true] %s517_s27 }
  0x12   :  { %543 = vmatpush.msra.mxu2 %v66_v2  ;;  %544 = vmatpush.msra.mxu3 %v66_v2  ;;  %s515_s24 = sshll.u32 %s664_s2, 4  ;;  %s516_s24 = int_to_ptr.vmem [resolvable:$true] %s515_s24 }
  0x13   :  { %109 = vmatpush.msra.mxu0 %v65_v3  ;;  %545 = vmatpush.msra.mxu1 %v65_v3 }
  0x14   :  { %546 = vmatpush.msra.mxu2 %v65_v3  ;;  %547 = vmatpush.msra.mxu3 %v65_v3 }
  0x15   :  { %528 = vmatmul.msk.f32.vlgmr.msra.gmra.mxu0 %vm55_vm0, %v691_v4  ;;  %530 = vmatmul.msk.f32.vlgmr.msra.gmra.mxu1 %vm55_vm0, %v693_v5 }
  0x16   :  { %532 = vmatmul.msk.f32.vlgmr.msra.gmra.mxu2 %vm55_vm0, %v695_v6  ;;  %534 = vmatmul.msk.f32.vlgmr.msra.gmra.mxu3 %vm55_vm0, %v697_v7 }
  0x17   :  { %556 = vset.pattern.permute.xlu0 %v663_v56  ;;  %558 = vset.pattern.permute.xlu2 %v663_v56 }
  0x18   :  { %557 = vset.pattern.permute.xlu1 %v663_v56 }
  0x1d   :  { %529 = vmatmul.msk.f32.gmra.mxu0 %vm55_vm0, %v707_v8  ;;  %531 = vmatmul.msk.f32.gmra.mxu1 %vm55_vm0, %v709_v9 }
  0x1e   :  { %533 = vmatmul.msk.f32.gmra.mxu2 %vm55_vm0, %v711_v10  ;;  %535 = vmatmul.msk.f32.gmra.mxu3 %vm55_vm0, %v713_v11 }
  0x92   :  { %v111_v14 = vpop.f32.mrf.mxu0  ;;  %v117_v15 = vpop.f32.mrf.mxu1 }
  0x93   :  { %v727_v16 = vadd.f32 %v136_v13, %v111_v14  ;;  %v729_v17 = vadd.f32 %v136_v13, %v117_v15 }
  0x95   :  { %v147_v18 = vsel %vm52_vm1, %v727_v16, -inf  ;;  %v161_v19 = vsel %vm52_vm1, %v729_v17, -inf }
  0x96   :  { %v148_v20 = vrot.slane %v147_v18, 4  ;;  %v162_v21 = vrot.slane %v161_v19, 4 }
  0x98   :  { %v149_v22 = vmax.f32 %v147_v18, %v148_v20  ;;  %v163_v23 = vmax.f32 %v161_v19, %v162_v21 }
  0x99   :  { %v123_v24 = vpop.f32.mrf.mxu2  ;;  %v129_v25 = vpop.f32.mrf.mxu3 }
  0x9a   :  { %v735_v26 = vadd.f32 %v136_v13, %v123_v24  ;;  %v737_v27 = vadd.f32 %v136_v13, %v129_v25  ;;  %v114_v28 = vpop.f32.mrf.mxu0  ;;  %v120_v29 = vpop.f32.mrf.mxu1  ;;  %v150_v30 = vrot.slane %v149_v22, 2  ;;  %v164_v33 = vrot.slane %v163_v23, 2 }
  0x9b   :  { %v739_v31 = vadd.f32 %v136_v13, %v114_v28  ;;  %v741_v32 = vadd.f32 %v136_v13, %v120_v29 }
  0x9c   :  { %v175_v34 = vsel %vm52_vm1, %v735_v26, -inf  ;;  %v189_v35 = vsel %vm52_vm1, %v737_v27, -inf  ;;  %v151_v42 = vmax.f32 %v149_v22, %v150_v30  ;;  %v165_v48 = vmax.f32 %v163_v23, %v164_v33 }
  0x9d   :  { %v176_v36 = vrot.slane %v175_v34, 4  ;;  %v190_v37 = vrot.slane %v189_v35, 4  ;;  %v154_v38 = vsel %vm52_vm1, %v739_v31, -inf  ;;  %v168_v39 = vsel %vm52_vm1, %v741_v32, -inf }
  0x9e   :  { %v155_v40 = vrot.slane %v154_v38, 4  ;;  %v169_v41 = vrot.slane %v168_v39, 4  ;;  %v152_v57 = vrot.slane %v151_v42, 1  ;;  %v166_v63 = vrot.slane %v165_v48, 1 }
  0x9f   :  { %v177_v43 = vmax.f32 %v175_v34, %v176_v36  ;;  %v191_v44 = vmax.f32 %v189_v35, %v190_v37 }
  0xa0   :  { %v156_v45 = vmax.f32 %v154_v38, %v155_v40  ;;  %v170_v46 = vmax.f32 %v168_v39, %v169_v41  ;;  %v153_v15 = vmax.f32 %v151_v42, %v152_v57  ;;  %v167_v20 = vmax.f32 %v165_v48, %v166_v63  ;;  %v766_v42 = vld [vmem:[#allocation2] sm:$0xff] }
  0xa1   :  { %v178_v49 = vrot.slane %v177_v43, 2  ;;  %v126_v50 = vpop.f32.mrf.mxu2  ;;  %v132_v51 = vpop.f32.mrf.mxu3  ;;  %v192_v58 = vrot.slane %v191_v44, 2 }
  0xa2   :  { %v157_v52 = vrot.slane %v156_v45, 2  ;;  %v171_v53 = vrot.slane %v170_v46, 2  ;;  %v753_v54 = vadd.f32 %v136_v13, %v126_v50  ;;  %v755_v55 = vadd.f32 %v136_v13, %v132_v51 }
  0xa3   :  { %v179_v2 = vmax.f32 %v177_v43, %v178_v49  ;;  %v193_v18 = vmax.f32 %v191_v44, %v192_v58 }
  0xa4   :  { %v158_v59 = vmax.f32 %v156_v45, %v157_v52  ;;  %v172_v60 = vmax.f32 %v170_v46, %v171_v53  ;;  %v182_v61 = vsel %vm52_vm1, %v753_v54, -inf  ;;  %v196_v62 = vsel %vm52_vm1, %v755_v55, -inf }
  0xa5   :  { %v183_v0 = vrot.slane %v182_v61, 4  ;;  %v197_v1 = vrot.slane %v196_v62, 4  ;;  %v180_v23 = vrot.slane %v179_v2, 1  ;;  %v194_v33 = vrot.slane %v193_v18, 1 }
  0xa6   :  { %v159_v3 = vrot.slane %v158_v59, 1  ;;  %v173_v12 = vrot.slane %v172_v60, 1 }
  0xa7   :  { %v184_v13 = vmax.f32 %v182_v61, %v183_v0  ;;  %v198_v14 = vmax.f32 %v196_v62, %v197_v1  ;;  %v181_v37 = vmax.f32 %v179_v2, %v180_v23  ;;  %v195_v39 = vmax.f32 %v193_v18, %v194_v33 }
  0xa8   :  { %v160_v19 = vmax.f32 %v158_v59, %v159_v3  ;;  %v174_v25 = vmax.f32 %v172_v60, %v173_v12 }
  0xa9   :  { %v185_v21 = vrot.slane %v184_v13, 2  ;;  %v199_v22 = vrot.slane %v198_v14, 2 }
  0xaa   :  { %v212_v24 = vsel %vm211_vm2, %v160_v19, %v153_v15 }
  0xab   :  { %v214_v28 = vsel %vm213_vm3, %v167_v20, %v212_v24  ;;  %v186_v29 = vmax.f32 %v184_v13, %v185_v21  ;;  %v200_v30 = vmax.f32 %v198_v14, %v199_v22 }
  0xac   :  { %v216_v34 = vsel %vm215_vm4, %v174_v25, %v214_v28 }
  0xad   :  { %v187_v35 = vrot.slane %v186_v29, 1  ;;  %v201_v36 = vrot.slane %v200_v30, 1  ;;  %v218_v40 = vsel %vm217_vm5, %v181_v37, %v216_v34 }
  0xaf   :  { %v188_v38 = vmax.f32 %v186_v29, %v187_v35  ;;  %v202_v43 = vmax.f32 %v200_v30, %v201_v36 }
  0xb1   :  { %v220_v41 = vsel %vm219_vm6, %v188_v38, %v218_v40 }
  0xb2   :  { %v222_v44 = vsel %vm221_vm7, %v195_v39, %v220_v41 }
  0xb3   :  { %v224_v45 = vsel %vm223_vm8, %v202_v43, %v222_v44 }
  0xb4   :  { %v771_v46 = vmax.f32 %v766_v42, %v224_v45 }
  0xb6   :  { %v237_v47 = vrot.slane %v771_v46, 7  ;;  %483 = vst.msk [vmem:[#allocation2] sm:$0xff] %vm52_vm1, %v771_v46  ;;  %v238_v48 = vperm.slane %v771_v46, 0  ;;  %v234_v49 = vrot.slane %v771_v46, 4  ;;  %v232_v50 = vrot.slane %v771_v46, 2 }
  0xb7   :  { %v231_v51 = vrot.slane %v771_v46, 1  ;;  %v235_v52 = vrot.slane %v771_v46, 5  ;;  %v233_v53 = vrot.slane %v771_v46, 3  ;;  %v236_v56 = vrot.slane %v771_v46, 6 }
  0xb8   :  { %v245_v57 = vperm.slane %v237_v47, 0  ;;  %v254_v58 = vsub.f32 %v727_v16, %v238_v48  ;;  %v242_v59 = vperm.slane %v234_v49, 0  ;;  %v240_v60 = vperm.slane %v232_v50, 0 }
  0xb9   :  { %v239_v61 = vperm.slane %v231_v51, 0  ;;  %v243_v62 = vperm.slane %v235_v52, 0  ;;  %v241_v63 = vperm.slane %v233_v53, 0  ;;  %v244_v0 = vperm.slane %v236_v56, 0 }
  0xba   :  { %v261_v1 = vsub.f32 %v755_v55, %v245_v57  ;;  %v262_v2 = vmul.f32 1.442695, %v254_v58  ;;  %v258_v3 = vsub.f32 %v735_v26, %v242_v59  ;;  %v256_v12 = vsub.f32 %v729_v17, %v240_v60 }
  0xbb   :  { %v255_v13 = vsub.f32 %v739_v31, %v239_v61  ;;  %v259_v14 = vsub.f32 %v753_v54, %v243_v62  ;;  %v257_v15 = vsub.f32 %v741_v32, %v241_v63  ;;  %v260_v16 = vsub.f32 %v737_v27, %v244_v0 }
  0xbc   :  { %v276_v18 = vmul.f32 1.442695, %v261_v1  ;;  %559 = vpow2.f32 %v262_v2  ;;  %v270_v19 = vmul.f32 1.442695, %v258_v3  ;;  %v266_v20 = vmul.f32 1.442695, %v256_v12 }
  0xbd   :  { %v264_v21 = vmul.f32 1.442695, %v255_v13  ;;  %v272_v55 = vmul.f32 1.442695, %v259_v14  ;;  %v268_v22 = vmul.f32 1.442695, %v257_v15  ;;  %v227_v49 = vsub.f32 %v766_v42, %v771_v46 }
  0xbe   :  { %561 = vpow2.f32 %v276_v18  ;;  %v274_v26 = vmul.f32 1.442695, %v260_v16 }
  0xbf   :  { %563 = vpow2.f32 %v270_v19  ;;  %v228_v1 = vmul.f32 1.442695, %v227_v49 }
  0xc0   :  { %565 = vpow2.f32 %v266_v20 }
  0xc1   :  { %567 = vpow2.f32 %v264_v21 }
  0xc2   :  { %v560_v17 = vpop.eup %559  ;;  %569 = vpow2.f32 %v272_v55 }
  0xc3   :  { %356 = vperm.xlu0 %556, %v560_v17   ;;  %v280_v31 = vsel %vm52_vm1, %v560_v17, 0.0  ;;  %571 = vpow2.f32 %v268_v22 }
  0xc4   :  { %v792_v32 = vpop.eup %561  ;;  %v281_v27 = vrot.slane %v280_v31, 4  ;;  %573 = vpow2.f32 %v274_v26 }
  0xc5   :  { %v564_v54 = vpop.eup %563  ;;  %v329_v23 = vsel %vm52_vm1, %v792_v32, 0.0  ;;  %575 = vpow2.f32 %v228_v1 }
  0xc6   :  { %v566_v24 = vpop.eup %565  ;;  %v330_v25 = vrot.slane %v329_v23, 4  ;;  %v282_v28 = vadd.f32 %v281_v27, %v280_v31  ;;  %376 = vperm.xlu2 %558, %v564_v54   ;;  %v308_v29 = vsel %vm52_vm1, %v564_v54, 0.0 }
  0xc7   :  { %v568_v30 = vpop.eup %567  ;;  %v309_v33 = vrot.slane %v308_v29, 4  ;;  %366 = vperm.xlu1 %557, %v566_v24   ;;  %v294_v34 = vsel %vm52_vm1, %v566_v24, 0.0 }
  0xc8   :  { %v570_v35 = vpop.eup %569  ;;  %v283_v36 = vrot.slane %v282_v28, 2  ;;  %v295_v37 = vrot.slane %v294_v34, 4  ;;  %v287_v38 = vsel %vm52_vm1, %v568_v30, 0.0  ;;  %v331_v45 = vadd.f32 %v330_v25, %v329_v23 }
  0xc9   :  { %v572_v39 = vpop.eup %571  ;;  %v310_v40 = vadd.f32 %v309_v33, %v308_v29  ;;  %v288_v41 = vrot.slane %v287_v38, 4  ;;  %v315_v43 = vsel %vm52_vm1, %v570_v35, 0.0 }
  0xca   :  { %v574_v44 = vpop.eup %573  ;;  %v296_v47 = vadd.f32 %v295_v37, %v294_v34  ;;  %v316_v48 = vrot.slane %v315_v43, 4  ;;  %v284_v50 = vadd.f32 %v283_v36, %v282_v28  ;;  %v301_v52 = vsel %vm52_vm1, %v572_v39, 0.0 }
  0xcb   :  { %361 = vperm.xlu0 %556, %v568_v30   ;;  %v289_v51 = vadd.f32 %v288_v41, %v287_v38  ;;  %v322_v53 = vsel %vm52_vm1, %v574_v44, 0.0  ;;  %v311_v56 = vrot.slane %v310_v40, 2  ;;  %v302_v60 = vrot.slane %v301_v52, 4  ;;  %v576_v29 = vpop.eup %575 }
  0xcc   :  { %v297_v57 = vrot.slane %v296_v47, 2  ;;  %v317_v58 = vadd.f32 %v316_v48, %v315_v43  ;;  %v323_v61 = vrot.slane %v322_v53, 4  ;;  %v332_v62 = vrot.slane %v331_v45, 2 }
  0xcd   :  { %v290_v59 = vrot.slane %v289_v51, 2  ;;  %v285_v2 = vrot.slane %v284_v50, 1  ;;  %v303_v46 = vadd.f32 %v302_v60, %v301_v52  ;;  %v312_v12 = vadd.f32 %v311_v56, %v310_v40 }
  0xce   :  { %v298_v63 = vadd.f32 %v297_v57, %v296_v47  ;;  %v318_v0 = vrot.slane %v317_v58, 2  ;;  %381 = vperm.xlu2 %558, %v570_v35   ;;  %v324_v3 = vadd.f32 %v323_v61, %v322_v53  ;;  %v333_v19 = vadd.f32 %v332_v62, %v331_v45  ;;  %v278_v35 = vld [vmem:[#allocation3] sm:$0xff] }
  0xcf   :  { %v291_v42 = vadd.f32 %v290_v59, %v289_v51  ;;  %371 = vperm.xlu1 %557, %v572_v39   ;;  %v304_v16 = vrot.slane %v303_v46, 2  ;;  %v286_v21 = vadd.f32 %v285_v2, %v284_v50  ;;  %v313_v17 = vrot.slane %v312_v12, 1 }
  0xd0   :  { %v299_v13 = vrot.slane %v298_v63, 1  ;;  %v319_v15 = vadd.f32 %v318_v0, %v317_v58  ;;  %v325_v18 = vrot.slane %v324_v3, 2  ;;  %v334_v25 = vrot.slane %v333_v19, 1 }
  0xd1   :  { %v292_v14 = vrot.slane %v291_v42, 1  ;;  %v305_v22 = vadd.f32 %v304_v16, %v303_v46  ;;  %v314_v30 = vadd.f32 %v313_v17, %v312_v12  ;;  %v279_v41 = vmul.f32 %v576_v29, %v278_v35 }
  0xd2   :  { %v300_v20 = vadd.f32 %v299_v13, %v298_v63  ;;  %v326_v26 = vadd.f32 %v325_v18, %v324_v3  ;;  %v320_v27 = vrot.slane %v319_v15, 1  ;;  %v335_v38 = vadd.f32 %v334_v25, %v333_v19 }
  0xd3   :  { %v293_v55 = vadd.f32 %v292_v14, %v291_v42  ;;  %386 = vperm.xlu0 %556, %v574_v44   ;;  %v306_v54 = vrot.slane %v305_v22, 1 }
  0xd4   :  { %v327_v24 = vrot.slane %v326_v26, 1  ;;  %v321_v33 = vadd.f32 %v320_v27, %v319_v15 }
  0xd5   :  { %v344_v31 = vsel %vm211_vm2, %v293_v55, %v286_v21  ;;  %v307_v28 = vadd.f32 %v306_v54, %v305_v22 }
  0xd6   :  { %v345_v23 = vsel %vm213_vm3, %v300_v20, %v344_v31  ;;  %v328_v37 = vadd.f32 %v327_v24, %v326_v26 }
  0xd7   :  { %391 = vperm.xlu1 %557, %v792_v32   ;;  %v346_v34 = vsel %vm215_vm4, %v307_v28, %v345_v23 }
  0xd8   :  { %v347_v36 = vsel %vm217_vm5, %v314_v30, %v346_v34 }
  0xd9   :  { %v348_v39 = vsel %vm219_vm6, %v321_v33, %v347_v36 }
  0xda   :  { %v349_v40 = vsel %vm221_vm7, %v328_v37, %v348_v39 }
  0xdb   :  { %461 = vperm.xlu0 %556, %v576_v29   ;;  %v350_v43 = vsel %vm223_vm8, %v335_v38, %v349_v40 }
  0xdc   :  { %v352_v44 = vadd.f32 %v350_v43, %v279_v41 }
  0xde   :  { %353 = vst.msk [vmem:[#allocation3] sm:$0xff] %vm52_vm1, %v352_v44 }
  0xe5   :  { %v488_v32 = vld [vmem:[#allocation3] sm:$0xff] }
  0xe6   :  { %491 = vperm.xlu2 %558, %v488_v32  }
 0x120   :  { %v377_v45 = vpop.permute.xlu2 %376 }
 0x121   :  { %v398_v48 = vmul.f32 %v377_v45, %v695_v6 }
 0x123   :  { %v430_v53 = vsel %vm55_vm0, %v398_v48, 0.0 }
 0x124   :  { %v431_v61 = vrot.slane %v430_v53, 4 }
 0x126   :  { %v432_v2 = vadd.f32 %v431_v61, %v430_v53 }
 0x128   :  { %v382_v47 = vpop.permute.xlu2 %381  ;;  %v433_v16 = vrot.slane %v432_v2, 2 }
 0x129   :  { %v399_v51 = vmul.f32 %v382_v47, %v711_v10 }
 0x12b   :  { %v437_v59 = vsel %vm55_vm0, %v399_v51, 0.0 }
 0x12c   :  { %v438_v0 = vrot.slane %v437_v59, 4 }
 0x135   :  { %v357_v49 = vpop.permute.xlu0 %356 }
 0x136   :  { %v394_v50 = vmul.f32 %v357_v49, %v691_v4 }
 0x138   :  { %v402_v52 = vsel %vm55_vm0, %v394_v50, 0.0 }
 0x139   :  { %v403_v56 = vrot.slane %v402_v52, 4  ;;  %v367_v57 = vpop.permute.xlu1 %366 }
 0x13a   :  { %v396_v58 = vmul.f32 %v367_v57, %v693_v5  ;;  %v439_v5 = vadd.f32 %v438_v0, %v437_v59 }
 0x13b   :  { %v404_v60 = vadd.f32 %v403_v56, %v402_v52 }
 0x13c   :  { %v416_v62 = vsel %vm55_vm0, %v396_v58, 0.0  ;;  %v440_v22 = vrot.slane %v439_v5, 2 }
 0x13d   :  { %v417_v6 = vrot.slane %v416_v62, 4  ;;  %v362_v63 = vpop.permute.xlu0 %361  ;;  %v405_v10 = vrot.slane %v404_v60, 2 }
 0x13e   :  { %v395_v4 = vmul.f32 %v362_v63, %v707_v8  ;;  %v441_v30 = vadd.f32 %v440_v22, %v439_v5 }
 0x13f   :  { %v418_v1 = vadd.f32 %v417_v6, %v416_v62  ;;  %v406_v14 = vadd.f32 %v405_v10, %v404_v60  ;;  %v458_v6 = vld [vmem:[#allocation4] sm:$0xff] }
 0x140   :  { %v409_v42 = vsel %vm55_vm0, %v395_v4, 0.0  ;;  %v824_v19 = vpop.permute.xlu2 %491  ;;  %v442_v47 = vrot.slane %v441_v30, 1 }
 0x141   :  { %v419_v46 = vrot.slane %v418_v1, 2  ;;  %v410_v3 = vrot.slane %v409_v42, 4  ;;  %v372_v12 = vpop.permute.xlu1 %371  ;;  %v407_v17 = vrot.slane %v406_v14, 1  ;;  %577 = vrcp.f32 %v824_v19 }
 0x142   :  { %v397_v13 = vmul.f32 %v372_v12, %v709_v9  ;;  %v434_v9 = vadd.f32 %v433_v16, %v432_v2  ;;  %v443_v58 = vadd.f32 %v442_v47, %v441_v30  ;;  %v505_v12 = vand.u32 2147483648, %v824_v19 }
 0x143   :  { %v411_v15 = vadd.f32 %v410_v3, %v409_v42  ;;  %v420_v18 = vadd.f32 %v419_v46, %v418_v1  ;;  %v408_v34 = vadd.f32 %v407_v17, %v406_v14  ;;  %vm499_vm10 = vweird.f32 %v824_v19 }
 0x144   :  { %v423_v20 = vsel %vm55_vm0, %v397_v13, 0.0  ;;  %v435_v37 = vrot.slane %v434_v9, 1  ;;  %v503_v5 = vand.u32 2147483647, %v824_v19  ;;  %v506_v14 = vor.u32 1.1754944e-38, %v505_v12 }
 0x145   :  { %v412_v8 = vrot.slane %v411_v15, 2  ;;  %v424_v21 = vrot.slane %v423_v20, 4  ;;  %v387_v55 = vpop.permute.xlu0 %386  ;;  %v421_v54 = vrot.slane %v420_v18, 1 }
 0x146   :  { %v400_v26 = vmul.f32 %v387_v55, %v697_v7  ;;  %v436_v50 = vadd.f32 %v435_v37, %v434_v9  ;;  %vm504_vm12 = vcmp.eq.f32.partialorder %v503_v5, 8.507059e+37 }
 0x147   :  { %v413_v31 = vadd.f32 %v412_v8, %v411_v15  ;;  %v425_v27 = vadd.f32 %v424_v21, %v423_v20  ;;  %v422_v38 = vadd.f32 %v421_v54, %v420_v18  ;;  %v578_v40 = vpop.eup %577 }
 0x148   :  { %v444_v23 = vsel %vm55_vm0, %v400_v26, 0.0  ;;  %v495_v51 = vmul.f32 %v578_v40, %v824_v19  ;;  %vm500_vm9 = vweird.f32 %v578_v40 }
 0x149   :  { %v414_v24 = vrot.slane %v413_v31, 1  ;;  %v426_v25 = vrot.slane %v425_v27, 2  ;;  %v445_v28 = vrot.slane %v444_v23, 4  ;;  %v392_v29 = vpop.permute.xlu1 %391  ;;  %vm501_vm11 = vmor %vm499_vm10, %vm500_vm9 }
 0x14a   :  { %v401_v33 = vmul.f32 %v392_v29, %v713_v11  ;;  %v496_v61 = vsub.f32 1.0, %v495_v51 }
 0x14b   :  { %v415_v35 = vadd.f32 %v414_v24, %v413_v31  ;;  %v427_v36 = vadd.f32 %v426_v25, %v425_v27  ;;  %v446_v7 = vadd.f32 %v445_v28, %v444_v23 }
 0x14c   :  { %v451_v39 = vsel %vm55_vm0, %v401_v33, 0.0  ;;  %v497_v1 = vmul.f32 %v578_v40, %v496_v61 }
 0x14d   :  { %v473_v41 = vsel %vm211_vm2, %v415_v35, %v408_v34  ;;  %v428_v43 = vrot.slane %v427_v36, 1  ;;  %v447_v44 = vrot.slane %v446_v7, 2  ;;  %v452_v32 = vrot.slane %v451_v39, 4  ;;  %v462_v0 = vpop.permute.xlu0 %461 }
 0x14e   :  { %v474_v45 = vsel %vm213_vm3, %v422_v38, %v473_v41  ;;  %v464_v2 = vmul.f32 %v462_v0, %v458_v6  ;;  %v498_v3 = vadd.f32 %v578_v40, %v497_v1 }
 0x14f   :  { %v429_v48 = vadd.f32 %v428_v43, %v427_v36  ;;  %v448_v49 = vadd.f32 %v447_v44, %v446_v7  ;;  %v453_v11 = vadd.f32 %v452_v32, %v451_v39 }
 0x150   :  { %v502_v13 = vsel %vm501_vm11, %v578_v40, %v498_v3 }
 0x151   :  { %v475_v52 = vsel %vm215_vm4, %v429_v48, %v474_v45  ;;  %v449_v53 = vrot.slane %v448_v49, 1  ;;  %v454_v56 = vrot.slane %v453_v11, 2  ;;  %v507_v15 = vsel %vm504_vm12, %v506_v14, %v502_v13 }
 0x152   :  { %v476_v57 = vsel %vm217_vm5, %v436_v50, %v475_v52 }
 0x153   :  { %v450_v59 = vadd.f32 %v449_v53, %v448_v49  ;;  %v455_v60 = vadd.f32 %v454_v56, %v453_v11  ;;  %v477_v63 = vsel %vm219_vm6, %v443_v58, %v476_v57 }
 0x155   :  { %v456_v62 = vrot.slane %v455_v60, 1  ;;  %v478_v4 = vsel %vm221_vm7, %v450_v59, %v477_v63 }
 0x157   :  { %v457_v10 = vadd.f32 %v456_v62, %v455_v60 }
 0x159   :  { %v479_v42 = vsel %vm223_vm8, %v457_v10, %v478_v4 }
 0x15a   :  { %v481_v46 = vadd.f32 %v479_v42, %v464_v2 }
 0x15c   :  { %482 = vst.msk [vmem:[#allocation4] sm:$0xff] %vm55_vm0, %v481_v46 }
 0x163   :  { %v487_v16 = vld [vmem:[#allocation4] sm:$0xff] }
 0x164   :  { %v508_v18 = vmul.f32 %v507_v15, %v487_v16 }
 0x166   :  { %509 = vst.msk [vmem:[#allocation11] sm:$0xff] %vm55_vm0, %v508_v18 }
 0x167   :  { %520 = dma.vmem_to_hbm [thread:$0]  %s516_s24, 128, %s518_s27, [#allocation8]  }
 0x168   :  { %655 = dma.done.wait [#allocation8], 128  }
 0x169   :  { %656 = vsyncadd [#allocation8], 4294967168 }
 0x16a   :  { %525 = vsyncpa [#allocation7], 1 }
 0x16b   :  { %526 = vsyncpa [#allocation10], 1 }
 0x16c   :  { %527 = vsyncpa [#allocation8], 1 }

</bundles_post_ra>
